<compile_context>
chip_gen: v7x
topology: tpu7x:2x2x1
jax: 0.10.0
libtpu: 0.0.40
codegen_flags: <defaults>
</compile_context>

<pallas_src>
import jax
import jax.numpy as jnp
from jax.experimental import pallas as pl
from jax.experimental.pallas import tpu as pltpu


def _round_up(x, m):
    return (x + m - 1) // m * m


# ----------------------------- fused kernel -----------------------------

def _make_embracenet_kernel(num_modalities, bypass_docking):
    """Ref order: avail (TB,M), selprob (TB,M), u (TB,E),
    then per modality x_m [, w_m, b_m], then out (TB,E)."""
    per_mod = 1 if bypass_docking else 3

    def kernel(avail_ref, selprob_ref, u_ref, *rest):
        out_ref = rest[-1]
        mod_refs = rest[:-1]
        tb, emb = out_ref.shape

        # selection_probabilities = normalize(selection_probabilities * avail)
        p = selprob_ref[...] * avail_ref[...]                     # (TB, M)
        p = p / jnp.sum(p, axis=-1, keepdims=True)

        u = u_ref[...]                                            # (TB, E) in [0,1)

        # Interleave docking (MXU, bf16 in / fp32 acc) with inverse-CDF
        # selection (disjoint interval masks -> single vselect per modality).
        acc = jnp.zeros((tb, emb), jnp.float32)
        lo = jnp.zeros((tb, 1), jnp.float32)
        for m in range(num_modalities):
            if bypass_docking:
                dock = mod_refs[m][...].astype(jnp.float32)
            else:
                x = mod_refs[per_mod * m][...]
                w = mod_refs[per_mod * m + 1][...]
                bias = mod_refs[per_mod * m + 2][...].astype(jnp.float32)
                y = jnp.dot(x, w, preferred_element_type=jnp.float32) + bias
                dock = jnp.maximum(y, 0.0)

            pm = p[:, m:m + 1]
            cdf = lo + pm
            if m == num_modalities - 1:
                # Last modality absorbs the rounding residual of the CDF, but
                # only if it has nonzero probability (torch.multinomial never
                # picks a zero-probability category).
                mask = jnp.logical_and(u >= lo, pm > 0.0)
            else:
                mask = jnp.logical_and(u >= lo, u < cdf)
            acc = jnp.where(mask, dock, acc)
            lo = cdf

        out_ref[...] = acc

    return kernel


# ----------------------------- wrapper -----------------------------

def embracenet_forward(params, input_list, seed,
                       availabilities=None, selection_probabilities=None,
                       bypass_docking=False, tile_b=256):
    num_modalities = len(input_list)
    batch = input_list[0].shape[0]
    if bypass_docking:
        embracement_size = input_list[0].shape[1]
    else:
        embracement_size = params[0]['w'].shape[1]

    # Pad batch to a sublane multiple and pick a batch tile; the grid
    # software-pipelines x/u/out DMAs while weights stay VMEM-resident.
    b_pad = _round_up(max(batch, 8), 8)
    if b_pad >= tile_b:
        tb = tile_b
        b_pad = _round_up(b_pad, tb)
    else:
        tb = b_pad
    grid = (b_pad // tb,)

    def pad_rows(a, value=0.0):
        if a.shape[0] == b_pad:
            return a
        pad = jnp.full((b_pad - a.shape[0],) + a.shape[1:], value, a.dtype)
        return jnp.concatenate([a, pad], axis=0)

    if availabilities is None:
        avail = jnp.ones((b_pad, num_modalities), jnp.float32)
    else:
        avail = pad_rows(availabilities.astype(jnp.float32), 1.0)
    if selection_probabilities is None:
        selprob = jnp.ones((b_pad, num_modalities), jnp.float32)
    else:
        selprob = pad_rows(selection_probabilities.astype(jnp.float32), 1.0)

    # torch.multinomial(replacement=True) reproduced distributionally via
    # inverse CDF on i.i.d. uniforms (drawn host-side; no in-kernel PRNG).
    u = jax.random.uniform(jax.random.PRNGKey(seed),
                           (b_pad, embracement_size), jnp.float32)

    mm_dtype = jnp.bfloat16   # bf16 into the MXU, fp32 accumulation
    flat, flat_specs = [], []
    tiled_bytes, resident_bytes, flops = 0, 0, 0
    for m in range(num_modalities):
        x = input_list[m]
        d = x.shape[1]
        if bypass_docking:
            xp = pad_rows(x.astype(jnp.float32))
            flat.append(xp)
            flat_specs.append(pl.BlockSpec((tb, d), lambda i: (i, 0)))
            tiled_bytes += tb * d * 4
        else:
            xp = pad_rows(x.astype(mm_dtype))
            w = params[m]['w'].astype(mm_dtype)
            b = params[m]['b'].reshape(1, -1).astype(jnp.float32)
            flat.extend([xp, w, b])
            flat_specs.append(pl.BlockSpec((tb, d), lambda i: (i, 0)))
            # Constant index_map -> weight/bias blocks fetched once per call.
            flat_specs.append(pl.BlockSpec((d, embracement_size),
                                           lambda i: (0, 0)))
            flat_specs.append(pl.BlockSpec((1, embracement_size),
                                           lambda i: (0, 0)))
            tiled_bytes += tb * d * 2
            resident_bytes += d * embracement_size * 2 + embracement_size * 4
            flops += 2 * b_pad * d * embracement_size

    in_specs = ([pl.BlockSpec((tb, num_modalities), lambda i: (i, 0)),
                 pl.BlockSpec((tb, num_modalities), lambda i: (i, 0)),
                 pl.BlockSpec((tb, embracement_size), lambda i: (i, 0))]
                + flat_specs)
    out_specs = pl.BlockSpec((tb, embracement_size), lambda i: (i, 0))

    out_tile_bytes = tb * embracement_size * 4
    tiled_bytes += out_tile_bytes + tb * embracement_size * 4 \
        + 2 * tb * num_modalities * 4
    # Resident weights + double-buffered streamed tiles + slack, budgeted to
    # fit v7x's smaller VMEM as well.
    vmem_limit = min(max(resident_bytes + 2 * tiled_bytes + (8 << 20),
                         32 << 20), 48 << 20)

    bytes_accessed = (sum(int(a.nbytes) for a in flat)
                      + int(avail.nbytes) + int(selprob.nbytes)
                      + int(u.nbytes) + b_pad * embracement_size * 4)

    kernel = _make_embracenet_kernel(num_modalities, bypass_docking)

    out = pl.pallas_call(
        kernel,
        out_shape=jax.ShapeDtypeStruct((b_pad, embracement_size),
                                       jnp.float32),
        grid=grid,
        in_specs=in_specs,
        out_specs=out_specs,
        compiler_params=pltpu.CompilerParams(
            dimension_semantics=("parallel",),
            vmem_limit_bytes=int(vmem_limit)),
        cost_estimate=pl.CostEstimate(flops=int(flops), transcendentals=0,
                                      bytes_accessed=int(bytes_accessed)),
    )(avail, selprob, u, *flat)

    return out[:batch]


# ----------------------------- parameters -----------------------------

def init_embracenet_params(key, input_size_list, embracement_size=256):
    """nn.Linear default init: U(-1/sqrt(fan_in), 1/sqrt(fan_in)).
    Weights stored already transposed as (in, out) -> no transpose per call."""
    params = []
    for d in input_size_list:
        key, kw, kb = jax.random.split(key, 3)
        bound = 1.0 / (d ** 0.5)
        w = jax.random.uniform(kw, (d, embracement_size), jnp.float32,
                               -bound, bound)
        b = jax.random.uniform(kb, (1, embracement_size), jnp.float32,
                               -bound, bound)
        params.append({'w': w, 'b': b})
    return params


# ----------------------------- main -----------------------------

if __name__ == "__main__":
    key = jax.random.PRNGKey(0)
    input_size_list = [16, 32, 64]     # three modalities with distinct sizes
    batch, embracement_size = 2, 256

    key, kp = jax.random.split(key)
    params = init_embracenet_params(kp, input_size_list, embracement_size)

    inputs = []
    for d in input_size_list:
        key, kx = jax.random.split(key)
        inputs.append(jax.random.normal(kx, (batch, d), dtype=jnp.float32))

    out = embracenet_forward(params, inputs, seed=1234)
    out = jax.block_until_ready(out)

    assert out.shape == (batch, embracement_size), out.shape
    assert bool(jnp.all(jnp.isfinite(out)))

    # Structural check (independent of the RNG stream): every output element
    # must equal one of the modalities' docking outputs at that position.
    docks = []
    for m in range(len(inputs)):
        y = jnp.dot(inputs[m], params[m]['w'],
                    precision=jax.lax.Precision.HIGHEST) + params[m]['b']
        docks.append(jnp.maximum(y, 0.0))
    docks = jnp.stack(docks, axis=0)                    # (M, B, E)
    min_diff = jnp.min(jnp.abs(docks - out[None]), axis=0)
    assert float(jnp.max(min_diff)) < 5e-2, float(jnp.max(min_diff))

    print("KERNEL_OK")
</pallas_src>

<mosaic_0001>
module attributes {stable_mosaic.version = 11 : i64} {
  func.func @kernel(%arg0: i32, %arg1: memref<8x3xf32, #tpu.memory_space<vmem>>, %arg2: memref<8x3xf32, #tpu.memory_space<vmem>>, %arg3: memref<8x256xf32, #tpu.memory_space<vmem>>, %arg4: memref<8x16xbf16, #tpu.memory_space<vmem>>, %arg5: memref<16x256xbf16, #tpu.memory_space<vmem>>, %arg6: memref<1x256xf32, #tpu.memory_space<vmem>>, %arg7: memref<8x32xbf16, #tpu.memory_space<vmem>>, %arg8: memref<32x256xbf16, #tpu.memory_space<vmem>>, %arg9: memref<1x256xf32, #tpu.memory_space<vmem>>, %arg10: memref<8x64xbf16, #tpu.memory_space<vmem>>, %arg11: memref<64x256xbf16, #tpu.memory_space<vmem>>, %arg12: memref<1x256xf32, #tpu.memory_space<vmem>>, %arg13: memref<8x256xf32, #tpu.memory_space<vmem>>) attributes {dimension_semantics = [#tpu.dimension_semantics<parallel>], iteration_bounds = array<i64: 1>, scalar_prefetch = 0 : i64, scratch_operands = 0 : i64, tpu.core_type = #tpu.core_type<tc>, window_params = [{transform_indices = @transform_0, window_bounds = array<i64: 8, 3>}, {transform_indices = @transform_1, window_bounds = array<i64: 8, 3>}, {transform_indices = @transform_2, window_bounds = array<i64: 8, 256>}, {transform_indices = @transform_3, window_bounds = array<i64: 8, 16>}, {pipeline_mode = #tpu.pipeline_mode<synchronous>, transform_indices = @transform_4, window_bounds = array<i64: 16, 256>}, {pipeline_mode = #tpu.pipeline_mode<synchronous>, transform_indices = @transform_5, window_bounds = array<i64: 1, 256>}, {transform_indices = @transform_6, window_bounds = array<i64: 8, 32>}, {pipeline_mode = #tpu.pipeline_mode<synchronous>, transform_indices = @transform_7, window_bounds = array<i64: 32, 256>}, {pipeline_mode = #tpu.pipeline_mode<synchronous>, transform_indices = @transform_8, window_bounds = array<i64: 1, 256>}, {transform_indices = @transform_9, window_bounds = array<i64: 8, 64>}, {pipeline_mode = #tpu.pipeline_mode<synchronous>, transform_indices = @transform_10, window_bounds = array<i64: 64, 256>}, {pipeline_mode = #tpu.pipeline_mode<synchronous>, transform_indices = @transform_11, window_bounds = array<i64: 1, 256>}, {transform_indices = @transform_12, window_bounds = array<i64: 8, 256>}]} {
    %c0 = arith.constant 0 : index
    %c0_0 = arith.constant 0 : index
    %0 = vector.load %arg2[%c0, %c0_0] : memref<8x3xf32, #tpu.memory_space<vmem>>, vector<8x3xf32>
    %c0_1 = arith.constant 0 : index
    %c0_2 = arith.constant 0 : index
    %1 = vector.load %arg1[%c0_1, %c0_2] : memref<8x3xf32, #tpu.memory_space<vmem>>, vector<8x3xf32>
    %2 = arith.mulf %0, %1 : vector<8x3xf32>
    %cst = arith.constant dense<0.000000e+00> : vector<8xf32>
    %3 = vector.multi_reduction <add>, %2, %cst [1] : vector<8x3xf32> to vector<8xf32>
    %4 = vector.shape_cast %3 : vector<8xf32> to vector<8x1xf32>
    %5 = vector.broadcast %4 : vector<8x1xf32> to vector<8x3xf32>
    %6 = arith.divf %2, %5 : vector<8x3xf32>
    %c0_3 = arith.constant 0 : index
    %c0_4 = arith.constant 0 : index
    %7 = vector.load %arg3[%c0_3, %c0_4] : memref<8x256xf32, #tpu.memory_space<vmem>>, vector<8x256xf32>
    %cst_5 = arith.constant 0.000000e+00 : f32
    %8 = vector.broadcast %cst_5 : f32 to vector<8x256xf32>
    %cst_6 = arith.constant 0.000000e+00 : f32
    %9 = vector.broadcast %cst_6 : f32 to vector<8x1xf32>
    %c0_7 = arith.constant 0 : index
    %c0_8 = arith.constant 0 : index
    %10 = vector.load %arg4[%c0_7, %c0_8] : memref<8x16xbf16, #tpu.memory_space<vmem>>, vector<8x16xbf16>
    %c0_9 = arith.constant 0 : index
    %c0_10 = arith.constant 0 : index
    %11 = vector.load %arg5[%c0_9, %c0_10] : memref<16x256xbf16, #tpu.memory_space<vmem>>, vector<16x256xbf16>
    %c0_11 = arith.constant 0 : index
    %c0_12 = arith.constant 0 : index
    %12 = vector.load %arg6[%c0_11, %c0_12] : memref<1x256xf32, #tpu.memory_space<vmem>>, vector<1x256xf32>
    %cst_13 = arith.constant dense<0.000000e+00> : vector<8x256xf32>
    %13 = tpu.matmul %10, %11, %cst_13 {dimension_numbers = #tpu.dot_dimension_numbers<[1], [0], [0], [1], [0, 0, 1, 1], [], []>} : vector<8x16xbf16>, vector<16x256xbf16>, vector<8x256xf32> -> vector<8x256xf32>
    %14 = vector.broadcast %12 : vector<1x256xf32> to vector<8x256xf32>
    %15 = arith.addf %13, %14 : vector<8x256xf32>
    %cst_14 = arith.constant 0.000000e+00 : f32
    %16 = vector.broadcast %cst_14 : f32 to vector<8x256xf32>
    %17 = arith.maximumf %15, %16 : vector<8x256xf32>
    %18 = vector.extract_strided_slice %6 {offsets = [0, 0], sizes = [8, 1], strides = [1, 1]} : vector<8x3xf32> to vector<8x1xf32>
    %19 = arith.addf %9, %18 : vector<8x1xf32>
    %20 = vector.broadcast %9 : vector<8x1xf32> to vector<8x256xf32>
    %21 = arith.cmpf oge, %7, %20 : vector<8x256xf32>
    %22 = vector.broadcast %19 : vector<8x1xf32> to vector<8x256xf32>
    %23 = arith.cmpf olt, %7, %22 : vector<8x256xf32>
    %24 = arith.andi %21, %23 : vector<8x256xi1>
    %25 = arith.select %24, %17, %8 : vector<8x256xi1>, vector<8x256xf32>
    %c0_15 = arith.constant 0 : index
    %c0_16 = arith.constant 0 : index
    %26 = vector.load %arg7[%c0_15, %c0_16] : memref<8x32xbf16, #tpu.memory_space<vmem>>, vector<8x32xbf16>
    %c0_17 = arith.constant 0 : index
    %c0_18 = arith.constant 0 : index
    %27 = vector.load %arg8[%c0_17, %c0_18] : memref<32x256xbf16, #tpu.memory_space<vmem>>, vector<32x256xbf16>
    %c0_19 = arith.constant 0 : index
    %c0_20 = arith.constant 0 : index
    %28 = vector.load %arg9[%c0_19, %c0_20] : memref<1x256xf32, #tpu.memory_space<vmem>>, vector<1x256xf32>
    %cst_21 = arith.constant dense<0.000000e+00> : vector<8x256xf32>
    %29 = tpu.matmul %26, %27, %cst_21 {dimension_numbers = #tpu.dot_dimension_numbers<[1], [0], [0], [1], [0, 0, 1, 1], [], []>} : vector<8x32xbf16>, vector<32x256xbf16>, vector<8x256xf32> -> vector<8x256xf32>
    %30 = vector.broadcast %28 : vector<1x256xf32> to vector<8x256xf32>
    %31 = arith.addf %29, %30 : vector<8x256xf32>
    %cst_22 = arith.constant 0.000000e+00 : f32
    %32 = vector.broadcast %cst_22 : f32 to vector<8x256xf32>
    %33 = arith.maximumf %31, %32 : vector<8x256xf32>
    %34 = vector.extract_strided_slice %6 {offsets = [0, 1], sizes = [8, 1], strides = [1, 1]} : vector<8x3xf32> to vector<8x1xf32>
    %35 = arith.addf %19, %34 : vector<8x1xf32>
    %36 = vector.broadcast %19 : vector<8x1xf32> to vector<8x256xf32>
    %37 = arith.cmpf oge, %7, %36 : vector<8x256xf32>
    %38 = vector.broadcast %35 : vector<8x1xf32> to vector<8x256xf32>
    %39 = arith.cmpf olt, %7, %38 : vector<8x256xf32>
    %40 = arith.andi %37, %39 : vector<8x256xi1>
    %41 = arith.select %40, %33, %25 : vector<8x256xi1>, vector<8x256xf32>
    %c0_23 = arith.constant 0 : index
    %c0_24 = arith.constant 0 : index
    %42 = vector.load %arg10[%c0_23, %c0_24] : memref<8x64xbf16, #tpu.memory_space<vmem>>, vector<8x64xbf16>
    %c0_25 = arith.constant 0 : index
    %c0_26 = arith.constant 0 : index
    %43 = vector.load %arg11[%c0_25, %c0_26] : memref<64x256xbf16, #tpu.memory_space<vmem>>, vector<64x256xbf16>
    %c0_27 = arith.constant 0 : index
    %c0_28 = arith.constant 0 : index
    %44 = vector.load %arg12[%c0_27, %c0_28] : memref<1x256xf32, #tpu.memory_space<vmem>>, vector<1x256xf32>
    %cst_29 = arith.constant dense<0.000000e+00> : vector<8x256xf32>
    %45 = tpu.matmul %42, %43, %cst_29 {dimension_numbers = #tpu.dot_dimension_numbers<[1], [0], [0], [1], [0, 0, 1, 1], [], []>} : vector<8x64xbf16>, vector<64x256xbf16>, vector<8x256xf32> -> vector<8x256xf32>
    %46 = vector.broadcast %44 : vector<1x256xf32> to vector<8x256xf32>
    %47 = arith.addf %45, %46 : vector<8x256xf32>
    %cst_30 = arith.constant 0.000000e+00 : f32
    %48 = vector.broadcast %cst_30 : f32 to vector<8x256xf32>
    %49 = arith.maximumf %47, %48 : vector<8x256xf32>
    %50 = vector.extract_strided_slice %6 {offsets = [0, 2], sizes = [8, 1], strides = [1, 1]} : vector<8x3xf32> to vector<8x1xf32>
    %51 = vector.broadcast %35 : vector<8x1xf32> to vector<8x256xf32>
    %52 = arith.cmpf oge, %7, %51 : vector<8x256xf32>
    %cst_31 = arith.constant 0.000000e+00 : f32
    %53 = vector.broadcast %cst_31 : f32 to vector<8x1xf32>
    %54 = arith.cmpf ogt, %50, %53 : vector<8x1xf32>
    %55 = vector.broadcast %54 : vector<8x1xi1> to vector<8x256xi1>
    %56 = arith.andi %52, %55 : vector<8x256xi1>
    %57 = arith.select %56, %49, %41 : vector<8x256xi1>, vector<8x256xf32>
    %c0_32 = arith.constant 0 : index
    %c0_33 = arith.constant 0 : index
    %58 = vector.load %arg13[%c0_32, %c0_33] : memref<8x256xf32, #tpu.memory_space<vmem>>, vector<8x256xf32>
    tpu.vector_store %arg13[%c0_32, %c0_33], %57 {strides = array<i32>} : memref<8x256xf32, #tpu.memory_space<vmem>>, vector<8x256xf32>,
    return
  }
  func.func @transform_0(%arg0: i32) -> (i32, i32) {
    %c0_i32 = arith.constant 0 : i32
    %c0_i32_0 = arith.constant 0 : i32
    return %arg0, %c0_i32 : i32, i32
  }
  func.func @transform_1(%arg0: i32) -> (i32, i32) {
    %c0_i32 = arith.constant 0 : i32
    %c0_i32_0 = arith.constant 0 : i32
    return %arg0, %c0_i32 : i32, i32
  }
  func.func @transform_2(%arg0: i32) -> (i32, i32) {
    %c0_i32 = arith.constant 0 : i32
    %c0_i32_0 = arith.constant 0 : i32
    return %arg0, %c0_i32 : i32, i32
  }
  func.func @transform_3(%arg0: i32) -> (i32, i32) {
    %c0_i32 = arith.constant 0 : i32
    %c0_i32_0 = arith.constant 0 : i32
    return %arg0, %c0_i32 : i32, i32
  }
  func.func @transform_4(%arg0: i32) -> (i32, i32) {
    %c0_i32 = arith.constant 0 : i32
    %c0_i32_0 = arith.constant 0 : i32
    %c0_i32_1 = arith.constant 0 : i32
    return %c0_i32, %c0_i32_0 : i32, i32
  }
  func.func @transform_5(%arg0: i32) -> (i32, i32) {
    %c0_i32 = arith.constant 0 : i32
    %c0_i32_0 = arith.constant 0 : i32
    %c0_i32_1 = arith.constant 0 : i32
    return %c0_i32, %c0_i32_0 : i32, i32
  }
  func.func @transform_6(%arg0: i32) -> (i32, i32) {
    %c0_i32 = arith.constant 0 : i32
    %c0_i32_0 = arith.constant 0 : i32
    return %arg0, %c0_i32 : i32, i32
  }
  func.func @transform_7(%arg0: i32) -> (i32, i32) {
    %c0_i32 = arith.constant 0 : i32
    %c0_i32_0 = arith.constant 0 : i32
    %c0_i32_1 = arith.constant 0 : i32
    return %c0_i32, %c0_i32_0 : i32, i32
  }
  func.func @transform_8(%arg0: i32) -> (i32, i32) {
    %c0_i32 = arith.constant 0 : i32
    %c0_i32_0 = arith.constant 0 : i32
    %c0_i32_1 = arith.constant 0 : i32
    return %c0_i32, %c0_i32_0 : i32, i32
  }
  func.func @transform_9(%arg0: i32) -> (i32, i32) {
    %c0_i32 = arith.constant 0 : i32
    %c0_i32_0 = arith.constant 0 : i32
    return %arg0, %c0_i32 : i32, i32
  }
  func.func @transform_10(%arg0: i32) -> (i32, i32) {
    %c0_i32 = arith.constant 0 : i32
    %c0_i32_0 = arith.constant 0 : i32
    %c0_i32_1 = arith.constant 0 : i32
    return %c0_i32, %c0_i32_0 : i32, i32
  }
  func.func @transform_11(%arg0: i32) -> (i32, i32) {
    %c0_i32 = arith.constant 0 : i32
    %c0_i32_0 = arith.constant 0 : i32
    %c0_i32_1 = arith.constant 0 : i32
    return %c0_i32, %c0_i32_0 : i32, i32
  }
  func.func @transform_12(%arg0: i32) -> (i32, i32) {
    %c0_i32 = arith.constant 0 : i32
    %c0_i32_0 = arith.constant 0 : i32
    return %arg0, %c0_i32 : i32, i32
  }
}

</mosaic_0001>

<bundles_post_ra>
// kernel: tpu_custom_call.1
= control target key start
LH: loop header
LB: loop body
LE: loop exit
PB: predicated region body
PF: predicated region fallthrough
CT: control target
= control target key end

     0   :  { %17 = vsyncpa [#allocation3], 0  ;;  %s829_s0 = inlined_call_operand.vmem [shape: f32[8,3], index: 0, kind: input, shape index: {}]   ;;  %s830_s1 = inlined_call_operand.vmem [shape: f32[8,3], index: 1, kind: input, shape index: {}]   ;;  %s831_s2 = inlined_call_operand.vmem [shape: f32[8,256], index: 2, kind: input, shape index: {}]   ;;  %s832_s3 = inlined_call_operand.hbm [shape: bf16[8,16], index: 3, kind: input, shape index: {}]   ;;  %s833_s4 = inlined_call_operand.hbm [shape: bf16[16,256], index: 4, kind: input, shape index: {}]   ;;  %s834_s5 = inlined_call_operand.vmem [shape: f32[1,256], index: 5, kind: input, shape index: {}]   ;;  %s835_s6 = inlined_call_operand.hbm [shape: bf16[8,32], index: 6, kind: input, shape index: {}]   ;;  %s836_s7 = inlined_call_operand.vmem [shape: bf16[32,256], index: 7, kind: input, shape index: {}]   ;;  %s837_s8 = inlined_call_operand.hbm [shape: f32[1,256], index: 8, kind: input, shape index: {}]   ;;  %s838_s9 = inlined_call_operand.vmem [shape: bf16[8,64], index: 9, kind: input, shape index: {}]   ;;  %s839_s10 = inlined_call_operand.hbm [shape: bf16[64,256], index: 10, kind: input, shape index: {}]   ;;  %s840_s11 = inlined_call_operand.vmem [shape: f32[1,256], index: 11, kind: input, shape index: {}]   ;;  %s841_s12 = inlined_call_operand.hbm [shape: f32[8,256], index: 12, kind: output, shape index: {}]  }
   0x1   :  { %18 = vsyncpa [#allocation6], 0 }
   0x2   :  { %19 = vsyncpa [#allocation9], 0 }
   0x3   :  { %20 = vsyncpa [#allocation4], 0  ;;  %s637_s21 = smov [#allocation5]   ;;  %s497_s25 = scalar_lea.hbm %s833_s4, 256 }
   0x4   :  { %s42_s22 = sshll.u32 %s637_s21, 4  ;;  %p498_p0 = scmp.ne.s32.totalorder %s833_s4, %s497_s25  ;;  %s43_s22 = int_to_ptr.vmem [resolvable:$true] %s42_s22 }
   0x5   :  { %p501_p1 = scmp.lt.u32.totalorder %s497_s25, %s833_s4 }
   0x7   :  { %p503_p2 = pnand %p501_p1, %p498_p0 }
   0x9   :  { %506 = shalt.err (!%p503_p2)
}
   0xa   :  { %s507_s30 = scalar_lea.vmem %s43_s22, 256  ;;  %p512_p4 = scmp.lt.s32.totalorder %s43_s22, %s43_s22 }
   0xb   :  { %p508_p3 = scmp.ne.s32.totalorder %s43_s22, %s507_s30  ;;  %p513_p5 = scmp.lt.s32.totalorder %s507_s30, %s507_s30 }
   0xd   :  { %p514_p6 = por %p513_p5, %p512_p4 }
   0xf   :  { %p515_p7 = pnand %p514_p6, %p508_p3 }
  0x11   :  { %518 = shalt.err (!%p515_p7)
}
  0x12   :  { %s638_s13 = smov 128   ;;  %s639_s14 = smov 8  }
  0x13   :  { %48 = dma.hbm_to_vmem [thread:$0]  %s833_s4, 256, %s43_s22, [#allocation6], %s638_s13, %s638_s13, %s639_s14  }
  0x14   :  { %s640_s17 = smov [#allocation8]   ;;  %s641_s19 = smov [#allocation2]  }
  0x15   :  { %s69_s18 = sshll.u32 %s640_s17, 4  ;;  %s33_s20 = sshll.u32 %s641_s19, 4  ;;  %s70_s18 = int_to_ptr.vmem [resolvable:$true] %s69_s18  ;;  %s34_s20 = int_to_ptr.vmem [resolvable:$true] %s33_s20 }
  0x16   :  { %s519_s24 = scalar_lea.hbm %s837_s8, 32 }
  0x17   :  { %p520_p8 = scmp.ne.s32.totalorder %s837_s8, %s519_s24  ;;  %p523_p9 = scmp.lt.u32.totalorder %s519_s24, %s837_s8 }
  0x19   :  { %p525_p10 = pnand %p523_p9, %p520_p8 }
  0x1b   :  { %528 = shalt.err (!%p525_p10)
}
  0x1c   :  { %s529_s4 = scalar_lea.vmem %s70_s18, 32  ;;  %p534_p12 = scmp.lt.s32.totalorder %s70_s18, %s70_s18 }
  0x1d   :  { %p530_p11 = scmp.ne.s32.totalorder %s70_s18, %s529_s4  ;;  %p535_p13 = scmp.lt.s32.totalorder %s529_s4, %s529_s4 }
  0x1f   :  { %p536_p0 = por %p535_p13, %p534_p12 }
  0x21   :  { %p537_p1 = pnand %p536_p0, %p530_p11 }
  0x23   :  { %540 = shalt.err (!%p537_p1)
}
  0x24   :  { %72 = dma.hbm_to_vmem [thread:$0]  %s837_s8, 32, %s70_s18, [#allocation9]  }
  0x25   :  { %s541_s16 = scalar_lea.hbm %s832_s3, 64 }
  0x26   :  { %p542_p2 = scmp.ne.s32.totalorder %s832_s3, %s541_s16  ;;  %p545_p3 = scmp.lt.u32.totalorder %s541_s16, %s832_s3 }
  0x28   :  { %p547_p4 = pnand %p545_p3, %p542_p2 }
  0x2a   :  { %550 = shalt.err (!%p547_p4)
}
  0x2b   :  { %s551_s24 = scalar_lea.vmem %s34_s20, 64  ;;  %p556_p6 = scmp.lt.s32.totalorder %s34_s20, %s34_s20 }
  0x2c   :  { %p552_p5 = scmp.ne.s32.totalorder %s34_s20, %s551_s24  ;;  %p557_p7 = scmp.lt.s32.totalorder %s551_s24, %s551_s24 }
  0x2e   :  { %p558_p8 = por %p557_p7, %p556_p6 }
  0x30   :  { %p559_p9 = pnand %p558_p8, %p552_p5 }
  0x32   :  { %562 = shalt.err (!%p559_p9)
}
  0x33   :  { %36 = dma.hbm_to_vmem [thread:$0]  %s832_s3, 64, %s34_s20, [#allocation3]  }
  0x34   :  { %s642_s25 = smov [#allocation7]   ;;  %s643_s27 = smov [#allocation10]  }
  0x35   :  { %s57_s26 = sshll.u32 %s642_s25, 4  ;;  %s80_s28 = sshll.u32 %s643_s27, 4  ;;  %s58_s26 = int_to_ptr.vmem [resolvable:$true] %s57_s26  ;;  %s81_s28 = int_to_ptr.vmem [resolvable:$true] %s80_s28 }
  0x36   :  { %s563_s29 = scalar_lea.hbm %s835_s6, 64 }
  0x37   :  { %p564_p10 = scmp.ne.s32.totalorder %s835_s6, %s563_s29  ;;  %p567_p11 = scmp.lt.u32.totalorder %s563_s29, %s835_s6 }
  0x39   :  { %p569_p12 = pnand %p567_p11, %p564_p10 }
  0x3b   :  { %572 = shalt.err (!%p569_p12)
}
  0x3c   :  { %s573_s3 = scalar_lea.vmem %s58_s26, 64  ;;  %p578_p0 = scmp.lt.s32.totalorder %s58_s26, %s58_s26 }
  0x3d   :  { %p574_p13 = scmp.ne.s32.totalorder %s58_s26, %s573_s3  ;;  %p579_p1 = scmp.lt.s32.totalorder %s573_s3, %s573_s3 }
  0x3f   :  { %p580_p2 = por %p579_p1, %p578_p0 }
  0x41   :  { %p581_p3 = pnand %p580_p2, %p574_p13 }
  0x43   :  { %584 = shalt.err (!%p581_p3)
}
  0x44   :  { %60 = dma.hbm_to_vmem [thread:$0]  %s835_s6, 64, %s58_s26, [#allocation6]  }
  0x45   :  { %s585_s24 = scalar_lea.hbm %s839_s10, 1024 }
  0x46   :  { %p586_p4 = scmp.ne.s32.totalorder %s839_s10, %s585_s24  ;;  %p589_p5 = scmp.lt.u32.totalorder %s585_s24, %s839_s10 }
  0x48   :  { %p591_p6 = pnand %p589_p5, %p586_p4 }
  0x4a   :  { %594 = shalt.err (!%p591_p6)
}
  0x4b   :  { %s595_s4 = scalar_lea.vmem %s81_s28, 1024  ;;  %p600_p8 = scmp.lt.s32.totalorder %s81_s28, %s81_s28 }
  0x4c   :  { %p596_p7 = scmp.ne.s32.totalorder %s81_s28, %s595_s4  ;;  %p601_p9 = scmp.lt.s32.totalorder %s595_s4, %s595_s4 }
  0x4e   :  { %p602_p10 = por %p601_p9, %p600_p8 }
  0x50   :  { %p603_p11 = pnand %p602_p10, %p596_p7 }
  0x52   :  { %606 = shalt.err (!%p603_p11)
}
  0x53   :  { %86 = dma.hbm_to_vmem [thread:$0]  %s839_s10, 1024, %s81_s28, [#allocation9], %s638_s13, %s638_s13, %s639_s14  }
  0x54   :  { %629 = dma.done.wait [#allocation3], 64  }
  0x55   :  { %630 = vsyncadd [#allocation3], 4294967232 }
  0x56   :  { %631 = dma.done.wait [#allocation6], 320  }
  0x57   :  { %632 = vsyncadd [#allocation6], 4294966976 }
  0x58   :  { %633 = dma.done.wait [#allocation9], 1056  }
  0x59   :  { %634 = vsyncadd [#allocation9], 4294966240  ;;  %v644_v0 = vmov 0   ;;  %v105_v1 = vld [vmem:[%s830_s1] sm:$0xff]  ;;  %vm108_vm0 = vcmask 23552   ;;  %vm141_vm1 = vcmask 130048   ;;  %v121_v41 = vlaneseq }
  0x5a   :  { %177 = vmatprep.mubr.bf16.mxu1 %v644_v0  ;;  %471 = vset.pattern.permute.xlu1 %v644_v0  ;;  %v106_v2 = vld [vmem:[%s829_s0] sm:$0xff]  ;;  %v116_v6 = vld [vmem:[#allocation2] sm:$0xf]  ;;  %v491_v14 = vld [vmem:[%s836_s7 + $0x14] ss:$8 sps:$4 sm:$0xff]   ;;  %vm239_vm2 = vcmask 261120  }
  0x5b   :  { %401 = vmatprep.mubr.bf16.mxu0 %v644_v0  ;;  %v107_v3 = vmul.f32 %v106_v2, %v105_v1  ;;  %v474_v4 = vld [vmem:[#allocation5 + $0x4] ss:$8 sps:$4 sm:$0xff]   ;;  %v476_v5 = vld [vmem:[#allocation5] ss:$8 sps:$4 sm:$0xff]   ;;  %v489_v16 = vld [vmem:[%s836_s7 + $0x10] ss:$8 sps:$4 sm:$0xff]  }
  0x5c   :  { %145 = vmatprep.subr.bf16.mxu1 %v474_v4  ;;  %v477_v8 = vld [vmem:[#allocation10 + $0x4] ss:$8 sps:$4 sm:$0xff]   ;;  %v479_v9 = vld [vmem:[#allocation10] ss:$8 sps:$4 sm:$0xff]   ;;  %v480_v10 = vld [vmem:[#allocation10 + $0x14] ss:$8 sps:$4 sm:$0xff]  }
  0x5d   :  { %v109_v7 = vsel %vm108_vm0, %v107_v3, 0.0  ;;  %146 = vmatpush1.bf16.msra.mxu1 %v476_v5  ;;  %v483_v11 = vld [vmem:[%s836_s7] ss:$8 sps:$4 sm:$0xff]   ;;  %v485_v12 = vld [vmem:[%s836_s7 + $0x4] ss:$8 sps:$4 sm:$0xff]   ;;  %369 = vmatprep.subr.bf16.mxu0 %v477_v8  ;;  %vm365_vm3 = vcmask 523264  }
  0x5e   :  { %110 = vadd.xlane.f32.xlu0 %v109_v7  ;;  %370 = vmatpush1.bf16.msra.mxu0 %v479_v9  ;;  %v482_v13 = vld [vmem:[#allocation10 + $0x10] ss:$8 sps:$4 sm:$0xff]   ;;  %v486_v15 = vld [vmem:[#allocation10 + $0x24] ss:$8 sps:$4 sm:$0xff]   ;;  %v488_v17 = vld [vmem:[#allocation10 + $0x20] ss:$8 sps:$4 sm:$0xff]  }
  0x5f   :  { %243 = vmatprep.subr.bf16.mxu1 %v485_v12  ;;  %371 = vmatprep.subr.bf16.mxu0 %v480_v10  ;;  %v492_v18 = vld [vmem:[#allocation10 + $0x34] ss:$8 sps:$4 sm:$0xff]   ;;  %v494_v20 = vld [vmem:[#allocation10 + $0x30] ss:$8 sps:$4 sm:$0xff]   ;;  %v645_v23 = vmov 2   ;;  %s646_s7 = smov 127  }
  0x60   :  { %445 = vmatmul.mubr.msk.bf16.vlgmr.msra.gmra.mrb[0].mxu1 %vm141_vm1, %v116_v6  ;;  %v202_v19 = vld [vmem:[#allocation7] sm:$0xf]  ;;  %v304_v21 = vld [vmem:[%s838_s9] sm:$0xf]  ;;  %473 = vset.pattern.permute.xlu0 %v645_v23  ;;  %v122_v42 = vshrl.u32 %v121_v41, 7 }
  0x61   :  { %275 = vmatprep.mubr.bf16.mxu1 %v644_v0  ;;  %244 = vmatpush1.bf16.msra.mxu1 %v483_v11  ;;  %v119_v44 = vld [vmem:[%s834_s5] sm:$0x3]  ;;  %v207_v46 = vld [vmem:[#allocation8] sm:$0x3]  ;;  %v115_v55 = vld [vmem:[%s831_s2 + $0x8] sm:$0xff] }
  0x62   :  { %245 = vmatprep.subr.bf16.mxu1 %v491_v14  ;;  %372 = vmatpush1.bf16.msra.mxu0 %v482_v13  ;;  %v123_v43 = vsub.s32 0, %v122_v42  ;;  %v127_v45 = vsub.s32 1, %v122_v42  ;;  %v114_v51 = vld [vmem:[%s831_s2] sm:$0xff]  ;;  %vm190_vm7 = vcmp.ge.f32.partialorder %v115_v55, 0.0  ;;  %s647_s2 = smov [#allocation11]  }
  0x63   :  { %373 = vmatprep.subr.bf16.mxu0 %v486_v15  ;;  %v313_v53 = vld [vmem:[%s840_s11] sm:$0x3]  ;;  %vm189_vm5 = vcmp.ge.f32.partialorder %v114_v51, 0.0  ;;  %s432_s5 = sshll.u32 %s647_s2, 4  ;;  %s433_s5 = int_to_ptr.vmem [resolvable:$true] %s432_s5 }
  0x64   :  { %v124_v47 = vrot.slane %v119_v44, %v123_v43  ;;  %v128_v48 = vrot.slane %v119_v44, %v127_v45  ;;  %v212_v49 = vrot.slane %v207_v46, %v123_v43  ;;  %v216_v50 = vrot.slane %v207_v46, %v127_v45  ;;  %s607_s11 = scalar_lea.vmem %s433_s5, 256  ;;  %p612_p13 = scmp.lt.s32.totalorder %s433_s5, %s433_s5 }
  0x65   :  { %246 = vmatpush1.bf16.msra.mxu1 %v489_v16  ;;  %v318_v59 = vrot.slane %v313_v53, %v123_v43  ;;  %v322_v60 = vrot.slane %v313_v53, %v127_v45  ;;  %p608_p12 = scmp.ne.s32.totalorder %s433_s5, %s607_s11  ;;  %p613_p0 = scmp.lt.s32.totalorder %s607_s11, %s607_s11 }
  0x66   :  { %374 = vmatpush1.bf16.msra.mxu0 %v488_v17 }
  0x67   :  { %375 = vmatprep.subr.bf16.mxu0 %v492_v18  ;;  %p614_p1 = por %p613_p0, %p612_p13 }
  0x68   :  { %450 = vmatmul.mubr.msk.bf16.vlgmr.msra.gmra.mrb[4].mxu1 %vm239_vm2, %v202_v19 }
  0x69   :  { %p615_p2 = pnand %p614_p1, %p608_p12 }
  0x6a   :  { %376 = vmatpush1.bf16.msra.mxu0 %v494_v20 }
  0x6d   :  { %459 = vmatmul.mubr.msk.bf16.vlgmr.msra.gmra.mrb[0].mxu0 %vm365_vm3, %v304_v21 }
  0xeb   :  { %v111_v22 = vpop.xlane.xlu0 %110 }
  0xec   :  { %495 = vrcp.f32 %v111_v22 }
  0xf6   :  { %v496_v24 = vpop.eup %495 }
  0xf7   :  { %v113_v25 = vmul.f32 %v496_v24, %v107_v3 }
  0xf9   :  { %193 = vperm.xlu1 %471, %v113_v25   ;;  %287 = vrot.lane.b32.xlu0 %v113_v25, %s646_s7  ;;  %vm414_vm4 = vcmp.gt.f32.partialorder %v113_v25, 0.0 }
  0xfa   :  { %v415_v40 = vsel %vm414_vm4, 1, %v644_v0 }
 0x133   :  { %v179_v26 = vpop.f32.mrb[0].mxu1 }
 0x134   :  { %v181_v27 = vpop.f32.mrb[1].mxu1  ;;  %v180_v54 = vadd.f32 %v179_v26, %v124_v47 }
 0x135   :  { %v183_v28 = vpop.f32.mrb[2].mxu1  ;;  %v182_v56 = vadd.f32 %v181_v27, %v128_v48 }
 0x136   :  { %v184_v29 = vpop.f32.mrb[3].mxu1  ;;  %v186_v61 = vmax.f32 %v180_v54, 0.0 }
 0x137   :  { %v187_v62 = vmax.f32 %v182_v56, 0.0 }
 0x13b   :  { %v277_v30 = vpop.f32.mrb[4].mxu1 }
 0x13c   :  { %v279_v31 = vpop.f32.mrb[5].mxu1  ;;  %v278_v57 = vadd.f32 %v277_v30, %v212_v49 }
 0x13d   :  { %v281_v32 = vpop.f32.mrb[6].mxu1  ;;  %v280_v58 = vadd.f32 %v279_v31, %v216_v50 }
 0x13e   :  { %v282_v33 = vpop.f32.mrb[7].mxu1  ;;  %v284_v63 = vmax.f32 %v278_v57, 0.0 }
 0x13f   :  { %v285_v0 = vmax.f32 %v280_v58, 0.0 }
 0x140   :  { %v403_v34 = vpop.f32.mrb[0].mxu0 }
 0x141   :  { %v405_v35 = vpop.f32.mrb[1].mxu0  ;;  %v404_v1 = vadd.f32 %v403_v34, %v318_v59 }
 0x142   :  { %v407_v36 = vpop.f32.mrb[2].mxu0  ;;  %v406_v3 = vadd.f32 %v405_v35, %v322_v60 }
 0x143   :  { %v408_v37 = vpop.f32.mrb[3].mxu0  ;;  %v410_v7 = vmax.f32 %v404_v1, 0.0 }
 0x144   :  { %v411_v9 = vmax.f32 %v406_v3, 0.0 }
 0x16b   :  { %v288_v38 = vpop.permute.xlu0 %287 }
 0x16c   :  { %v290_v39 = vadd.f32 %v288_v38, %v113_v25 }
 0x16e   :  { %295 = vperm.xlu1 %471, %v290_v39  }
 0x172   :  { %472 = vset.pattern.permute.xlu1 %v645_v23 }
 0x173   :  { %417 = vperm.xlu1 %472, %v415_v40  }
 0x178   :  { %v194_v52 = vpop.permute.xlu1 %193 }
 0x179   :  { %vm196_vm6 = vcmp.lt.f32.partialorder %v114_v51, %v194_v52  ;;  %vm197_vm8 = vcmp.lt.f32.partialorder %v115_v55, %v194_v52  ;;  %vm291_vm11 = vcmp.ge.f32.partialorder %v114_v51, %v194_v52  ;;  %vm292_vm14 = vcmp.ge.f32.partialorder %v115_v55, %v194_v52 }
 0x17a   :  { %vm198_vm9 = vmand %vm189_vm5, %vm196_vm6 }
 0x17b   :  { %vm199_vm10 = vmand %vm190_vm7, %vm197_vm8  ;;  %v200_v4 = vsel %vm198_vm9, %v186_v61, 0.0 }
 0x17c   :  { %v201_v5 = vsel %vm199_vm10, %v187_v62, 0.0 }
 0x1ed   :  { %v296_v2 = vpop.permute.xlu1 %295 }
 0x1ee   :  { %vm298_vm12 = vcmp.lt.f32.partialorder %v114_v51, %v296_v2  ;;  %vm299_vm13 = vcmp.lt.f32.partialorder %v115_v55, %v296_v2  ;;  %vm412_vm1 = vcmp.ge.f32.partialorder %v114_v51, %v296_v2  ;;  %vm413_vm3 = vcmp.ge.f32.partialorder %v115_v55, %v296_v2 }
 0x1ef   :  { %vm300_vm15 = vmand %vm291_vm11, %vm298_vm12 }
 0x1f0   :  { %vm301_vm0 = vmand %vm292_vm14, %vm299_vm13  ;;  %v302_v6 = vsel %vm300_vm15, %v284_v63, %v200_v4 }
 0x1f1   :  { %v303_v8 = vsel %vm301_vm0, %v285_v0, %v201_v5 }
 0x1f2   :  { %v418_v10 = vpop.permute.xlu1 %417 }
 0x1f3   :  { %vm419_vm2 = vcmp.eq.s32.totalorder %v418_v10, 1 }
 0x1f4   :  { %vm420_vm4 = vmand %vm412_vm1, %vm419_vm2 }
 0x1f5   :  { %vm421_vm5 = vmand %vm413_vm3, %vm419_vm2  ;;  %v422_v11 = vsel %vm420_vm4, %v410_v7, %v302_v6 }
 0x1f6   :  { %v423_v12 = vsel %vm421_vm5, %v411_v9, %v303_v8  ;;  %424 = vst [vmem:[#allocation11] sm:$0xff] %v422_v11 }
 0x1f7   :  { %425 = vst [vmem:[#allocation11 + $0x8] sm:$0xff] %v423_v12 }
 0x1f8   :  { %618 = shalt.err (!%p615_p2)
}
 0x1f9   :  { %s619_s6 = scalar_lea.hbm %s841_s12, 256 }
 0x1fa   :  { %p620_p3 = scmp.ne.s32.totalorder %s841_s12, %s619_s6  ;;  %p623_p4 = scmp.lt.u32.totalorder %s619_s6, %s841_s12 }
 0x1fc   :  { %p625_p5 = pnand %p623_p4, %p620_p3 }
 0x1fe   :  { %628 = shalt.err (!%p625_p5)
}
 0x1ff   :  { %435 = dma.vmem_to_hbm [thread:$0]  %s433_s5, 256, %s841_s12, [#allocation4]  }
 0x200   :  { %635 = dma.done.wait [#allocation4], 256  }
 0x201   :  { %636 = vsyncadd [#allocation4], 4294967040 }
 0x202   :  { %439 = vsyncpa [#allocation3], 1 }
 0x203   :  { %440 = vsyncpa [#allocation6], 1 }
 0x204   :  { %441 = vsyncpa [#allocation9], 1 }
 0x205   :  { %442 = vsyncpa [#allocation4], 1 }

</bundles_post_ra>
